<compile_context>
chip_gen: v7x
topology: tpu7x:2x2x1
jax: 0.10.0
libtpu: 0.0.40
codegen_flags: <defaults>
</compile_context>

<pallas_src>
import functools
import math

import jax
import jax.numpy as jnp
from jax.experimental import pallas as pl
from jax.experimental.pallas import tpu as pltpu

_LANE = 128
_TARGET_INPUT_TILE_BYTES = 4 * 1024 * 1024  # ~4 MiB input tile per buffer


def _vmem_budgets():
    """Return (tile budget bytes, scoped vmem limit bytes) per TPU generation."""
    cap = None
    try:
        cap = getattr(pltpu.get_tpu_info(), "vmem_capacity_bytes", None)
    except Exception:
        cap = None
    if cap is None:
        cap = 64 * 1024 * 1024  # conservative: assume the 64 MiB (v7x) part
    if cap >= 128 * 1024 * 1024:  # v5e / v6e: 128 MiB physical VMEM
        return 64 * 1024 * 1024, 96 * 1024 * 1024
    return 24 * 1024 * 1024, 44 * 1024 * 1024  # v7x: 64 MiB per TensorCore


def _layernorm_kernel(x_ref, gamma_ref, beta_ref, o_ref, *, eps, hidden):
    # x_ref: (tile_rows, D_pad)  gamma/beta: (1, D_pad)  o_ref: (tile_rows, D_pad)
    x = x_ref[...].astype(jnp.float32)
    d_pad = x.shape[-1]
    inv_d = 1.0 / hidden
    # Padded columns (if any) are zero, so the plain sum IS the valid-column sum.
    mean = jnp.sum(x, axis=-1, keepdims=True) * inv_d
    centered = x - mean
    if d_pad != hidden:
        # Mask pad columns out of the variance (they hold -mean after centering).
        lane = jax.lax.broadcasted_iota(jnp.int32, (1, d_pad), 1)
        sq = jnp.where(lane < hidden, centered, 0.0)
    else:
        sq = centered
    # PyTorch tensor.std(-1, unbiased=False): population std (divide by N).
    var = jnp.sum(sq * sq, axis=-1, keepdims=True) * inv_d
    std = jnp.sqrt(var)
    # Matches the module exactly: divide by (std + eps), NOT rsqrt(var + eps).
    # Per-row (tile_rows, 1) reciprocal, broadcast-multiplied; exact divide kept
    # so 1e-5 parity with the reference holds.
    inv = 1.0 / (std + eps)
    gamma = gamma_ref[...].astype(jnp.float32)
    beta = beta_ref[...].astype(jnp.float32)
    out = gamma * (centered * inv) + beta
    o_ref[...] = out.astype(o_ref.dtype)


def _choose_tile_rows(rows, d_pad, itemsize, budget_bytes):
    """Row tile sized by bytes (~4 MiB input tile), VMEM budget, sublane packing."""
    # Sublane packing: f32 -> 8, bf16/fp16 -> 16, int8/fp8 -> 32 rows per vreg.
    align = max(8, 32 // max(itemsize, 1))
    # Double-buffered input + output tiles plus ~3 live tile-sized f32 temps
    # (x cast, centered, output product chain).
    per_row_bytes = 2 * d_pad * (itemsize + itemsize) + 3 * d_pad * 4
    # TODO(synk): if even an `align`-row tile busts the budget (D ~100K+), fall
    # back to a 2-D grid tiling D with a two-pass mean/var reduction.
    t_budget = max(align, budget_bytes // max(per_row_bytes, 1))
    # Cap by bytes, not a fixed row count: stop growing once the input tile is
    # ~4 MiB (amortizes the ~600-cycle per-grid-step overhead; ~85% roofline).
    t_target = max(align, pl.cdiv(_TARGET_INPUT_TILE_BYTES, d_pad * itemsize))
    t = min(t_budget, t_target, max(rows, align))
    t = max(align, (t // align) * align)
    # Keep >= 8 grid steps when there are enough rows, so the "parallel" row
    # axis splits across v7x's 2 TensorCores with reasonable balance.
    min_steps = 8
    if rows > align * min_steps and pl.cdiv(rows, t) < min_steps:
        t = max(align, ((rows // min_steps) // align) * align)
    return int(t)


def layer_norm(x, gamma, beta, *, eps=1e-6, tile_rows=None):
    """LayerNorm over the last dim of x: gamma * (x - mean) / (std + eps) + beta."""
    orig_shape = x.shape
    D = orig_shape[-1]
    rows = math.prod(orig_shape[:-1]) if len(orig_shape) > 1 else 1
    x2 = x.reshape(rows, D)

    # Lane-dense hidden dim: pad D to the next multiple of 128 so kernel stores
    # are unmasked; slice the pad back off the output.  No-op for D % 128 == 0.
    D_pad = pl.cdiv(D, _LANE) * _LANE
    if D_pad != D:
        x2 = jnp.pad(x2, ((0, 0), (0, D_pad - D)))
        gamma2 = jnp.pad(gamma.reshape(1, D), ((0, 0), (0, D_pad - D)))
        beta2 = jnp.pad(beta.reshape(1, D), ((0, 0), (0, D_pad - D)))
    else:
        gamma2 = gamma.reshape(1, D)
        beta2 = beta.reshape(1, D)

    budget, vmem_limit = _vmem_budgets()
    if tile_rows is None:
        tile_rows = _choose_tile_rows(
            rows, D_pad, jnp.dtype(x2.dtype).itemsize, budget
        )

    # No row padding: Pallas masks the partial last block (reads padded, writes
    # masked); per-row math means padded rows can't pollute valid rows.
    grid = (pl.cdiv(rows, tile_rows),)

    out = pl.pallas_call(
        functools.partial(_layernorm_kernel, eps=eps, hidden=D),
        out_shape=jax.ShapeDtypeStruct((rows, D_pad), x.dtype),
        grid_spec=pltpu.PrefetchScalarGridSpec(
            num_scalar_prefetch=0,
            grid=grid,
            in_specs=[
                pl.BlockSpec((tile_rows, D_pad), lambda i: (i, 0)),
                pl.BlockSpec((1, D_pad), lambda i: (0, 0)),
                pl.BlockSpec((1, D_pad), lambda i: (0, 0)),
            ],
            out_specs=pl.BlockSpec((tile_rows, D_pad), lambda i: (i, 0)),
        ),
        compiler_params=pltpu.CompilerParams(
            dimension_semantics=("parallel",),
            vmem_limit_bytes=vmem_limit,
        ),
    )(x2, gamma2, beta2)

    if D_pad != D:
        out = out[:, :D]
    return out.reshape(orig_shape)


if __name__ == "__main__":
    key = jax.random.PRNGKey(0)
    batch, seq, hidden = 2, 8, 32

    x = jax.random.normal(key, (batch, seq, hidden), dtype=jnp.float32)

    # nn.Parameter(torch.ones(dimension)) / torch.zeros(dimension)
    gamma = jnp.ones((hidden,), dtype=jnp.float32)
    beta = jnp.zeros((hidden,), dtype=jnp.float32)
    eps = 1e-6

    y = layer_norm(x, gamma, beta, eps=eps)
    y = jax.block_until_ready(y)

    # Pure-JAX reference (population std, divide by (std + eps)).
    mean = jnp.mean(x, axis=-1, keepdims=True)
    std = jnp.sqrt(jnp.mean((x - mean) ** 2, axis=-1, keepdims=True))
    ref = gamma * (x - mean) / (std + eps) + beta
    assert jnp.allclose(y, ref, atol=1e-5, rtol=1e-5), "mismatch vs reference"

    print("KERNEL_OK")
</pallas_src>

<mosaic_0001>
module attributes {stable_mosaic.version = 11 : i64} {
  func.func @_layernorm_kernel(%arg0: i32, %arg1: memref<16x128xf32, #tpu.memory_space<vmem>>, %arg2: memref<1x128xf32, #tpu.memory_space<vmem>>, %arg3: memref<1x128xf32, #tpu.memory_space<vmem>>, %arg4: memref<16x128xf32, #tpu.memory_space<vmem>>) attributes {dimension_semantics = [#tpu.dimension_semantics<parallel>], iteration_bounds = array<i64: 1>, scalar_prefetch = 0 : i64, scratch_operands = 0 : i64, tpu.core_type = #tpu.core_type<tc>, window_params = [{transform_indices = @transform_0, window_bounds = array<i64: 16, 128>}, {pipeline_mode = #tpu.pipeline_mode<synchronous>, transform_indices = @transform_1, window_bounds = array<i64: 1, 128>}, {pipeline_mode = #tpu.pipeline_mode<synchronous>, transform_indices = @transform_2, window_bounds = array<i64: 1, 128>}, {transform_indices = @transform_3, window_bounds = array<i64: 16, 128>}]} {
    %c0 = arith.constant 0 : index
    %c0_0 = arith.constant 0 : index
    %0 = vector.load %arg1[%c0, %c0_0] : memref<16x128xf32, #tpu.memory_space<vmem>>, vector<16x128xf32>
    %cst = arith.constant dense<0.000000e+00> : vector<16xf32>
    %1 = vector.multi_reduction <add>, %0, %cst [1] : vector<16x128xf32> to vector<16xf32>
    %2 = vector.shape_cast %1 : vector<16xf32> to vector<16x1xf32>
    %cst_1 = arith.constant 3.125000e-02 : f32
    %3 = vector.broadcast %cst_1 : f32 to vector<16x1xf32>
    %4 = arith.mulf %2, %3 : vector<16x1xf32>
    %5 = vector.broadcast %4 : vector<16x1xf32> to vector<16x128xf32>
    %6 = arith.subf %0, %5 : vector<16x128xf32>
    %7 = tpu.iota {dimensions = array<i32: 1>} : vector<1x128xi32>
    %c32_i32 = arith.constant 32 : i32
    %8 = vector.broadcast %c32_i32 : i32 to vector<1x128xi32>
    %9 = arith.cmpi slt, %7, %8 : vector<1x128xi32>
    %cst_2 = arith.constant 0.000000e+00 : f32
    %10 = vector.shape_cast %9 : vector<1x128xi1> to vector<1x128xi1>
    %11 = vector.broadcast %10 : vector<1x128xi1> to vector<16x128xi1>
    %12 = vector.broadcast %cst_2 : f32 to vector<16x128xf32>
    %13 = arith.select %11, %6, %12 : vector<16x128xi1>, vector<16x128xf32>
    %14 = arith.mulf %13, %13 : vector<16x128xf32>
    %cst_3 = arith.constant dense<0.000000e+00> : vector<16xf32>
    %15 = vector.multi_reduction <add>, %14, %cst_3 [1] : vector<16x128xf32> to vector<16xf32>
    %16 = vector.shape_cast %15 : vector<16xf32> to vector<16x1xf32>
    %cst_4 = arith.constant 3.125000e-02 : f32
    %17 = vector.broadcast %cst_4 : f32 to vector<16x1xf32>
    %18 = arith.mulf %16, %17 : vector<16x1xf32>
    %19 = math.sqrt %18 : vector<16x1xf32>
    %cst_5 = arith.constant 9.99999997E-7 : f32
    %20 = vector.broadcast %cst_5 : f32 to vector<16x1xf32>
    %21 = arith.addf %19, %20 : vector<16x1xf32>
    %cst_6 = arith.constant 1.000000e+00 : f32
    %22 = vector.broadcast %cst_6 : f32 to vector<16x1xf32>
    %23 = arith.divf %22, %21 : vector<16x1xf32>
    %c0_7 = arith.constant 0 : index
    %c0_8 = arith.constant 0 : index
    %24 = vector.load %arg2[%c0_7, %c0_8] : memref<1x128xf32, #tpu.memory_space<vmem>>, vector<1x128xf32>
    %c0_9 = arith.constant 0 : index
    %c0_10 = arith.constant 0 : index
    %25 = vector.load %arg3[%c0_9, %c0_10] : memref<1x128xf32, #tpu.memory_space<vmem>>, vector<1x128xf32>
    %26 = vector.broadcast %23 : vector<16x1xf32> to vector<16x128xf32>
    %27 = arith.mulf %6, %26 : vector<16x128xf32>
    %28 = vector.broadcast %24 : vector<1x128xf32> to vector<16x128xf32>
    %29 = arith.mulf %28, %27 : vector<16x128xf32>
    %30 = vector.broadcast %25 : vector<1x128xf32> to vector<16x128xf32>
    %31 = arith.addf %29, %30 : vector<16x128xf32>
    %c0_11 = arith.constant 0 : index
    %c0_12 = arith.constant 0 : index
    %32 = vector.load %arg4[%c0_11, %c0_12] : memref<16x128xf32, #tpu.memory_space<vmem>>, vector<16x128xf32>
    tpu.vector_store %arg4[%c0_11, %c0_12], %31 {strides = array<i32>} : memref<16x128xf32, #tpu.memory_space<vmem>>, vector<16x128xf32>,
    return
  }
  func.func @transform_0(%arg0: i32) -> (i32, i32) {
    %c0_i32 = arith.constant 0 : i32
    %c0_i32_0 = arith.constant 0 : i32
    return %arg0, %c0_i32 : i32, i32
  }
  func.func @transform_1(%arg0: i32) -> (i32, i32) {
    %c0_i32 = arith.constant 0 : i32
    %c0_i32_0 = arith.constant 0 : i32
    %c0_i32_1 = arith.constant 0 : i32
    return %c0_i32, %c0_i32_0 : i32, i32
  }
  func.func @transform_2(%arg0: i32) -> (i32, i32) {
    %c0_i32 = arith.constant 0 : i32
    %c0_i32_0 = arith.constant 0 : i32
    %c0_i32_1 = arith.constant 0 : i32
    return %c0_i32, %c0_i32_0 : i32, i32
  }
  func.func @transform_3(%arg0: i32) -> (i32, i32) {
    %c0_i32 = arith.constant 0 : i32
    %c0_i32_0 = arith.constant 0 : i32
    return %arg0, %c0_i32 : i32, i32
  }
}

</mosaic_0001>

<bundles_post_ra>
// kernel: tpu_custom_call.1
= control target key start
LH: loop header
LB: loop body
LE: loop exit
PB: predicated region body
PF: predicated region fallthrough
CT: control target
= control target key end

     0   :  { %8 = vsyncpa [#allocation3], 0  ;;  %s235_s0 = inlined_call_operand.hbm [shape: f32[16,128], index: 0, kind: input, shape index: {}]   ;;  %s236_s1 = inlined_call_operand.vmem [shape: f32[1,128], index: 1, kind: input, shape index: {}]   ;;  %s237_s2 = inlined_call_operand.vmem [shape: f32[1,128], index: 2, kind: input, shape index: {}]   ;;  %s238_s3 = inlined_call_operand.hbm [shape: f32[16,128], index: 3, kind: output, shape index: {}]  }
   0x1   :  { %9 = vsyncpa [#allocation4], 0  ;;  %s175_s12 = smov [#allocation2]   ;;  %s127_s16 = scalar_lea.hbm %s235_s0, 256 }
   0x2   :  { %s15_s13 = sshll.u32 %s175_s12, 4  ;;  %p128_p0 = scmp.ne.s32.totalorder %s235_s0, %s127_s16  ;;  %s16_s13 = int_to_ptr.vmem [resolvable:$true] %s15_s13 }
   0x3   :  { %p131_p1 = scmp.lt.u32.totalorder %s127_s16, %s235_s0 }
   0x5   :  { %p133_p2 = pnand %p131_p1, %p128_p0 }
   0x7   :  { %136 = shalt.err (!%p133_p2)
}
   0x8   :  { %s137_s21 = scalar_lea.vmem %s16_s13, 256  ;;  %p142_p4 = scmp.lt.s32.totalorder %s16_s13, %s16_s13 }
   0x9   :  { %p138_p3 = scmp.ne.s32.totalorder %s16_s13, %s137_s21  ;;  %p143_p5 = scmp.lt.s32.totalorder %s137_s21, %s137_s21 }
   0xb   :  { %p144_p6 = por %p143_p5, %p142_p4 }
   0xd   :  { %p145_p7 = pnand %p144_p6, %p138_p3 }
   0xf   :  { %148 = shalt.err (!%p145_p7)
}
  0x10   :  { %s176_s22 = smov 128   ;;  %s177_s23 = smov 8  }
  0x11   :  { %21 = dma.hbm_to_vmem [thread:$0]  %s235_s0, 256, %s16_s13, [#allocation3], %s176_s22, %s176_s22, %s177_s23  }
  0x12   :  { %171 = dma.done.wait [#allocation3], 256  }
  0x13   :  { %172 = vsyncadd [#allocation3], 4294967040  ;;  %v29_v0 = vld [vmem:[#allocation2] sm:$0xff]  ;;  %v30_v1 = vld [vmem:[#allocation2 + $0x8] sm:$0xff]  ;;  %v39_v2 = vlaneseq  ;;  %s178_s29 = smov [#allocation5]  }
  0x14   :  { %31 = vadd.xlane.f32.xlu0 %v29_v0  ;;  %v113_v31 = vld [vmem:[%s236_s1] ss:$0 sm:$0xff]  ;;  %s101_s30 = sshll.u32 %s178_s29, 4  ;;  %s102_s30 = int_to_ptr.vmem [resolvable:$true] %s101_s30 }
  0x15   :  { %v40_v3 = vand.u32 127, %v39_v2  ;;  %v114_v33 = vld [vmem:[%s237_s2] ss:$0 sm:$0xff]  ;;  %s149_s4 = scalar_lea.vmem %s102_s30, 256  ;;  %p154_p9 = scmp.lt.s32.totalorder %s102_s30, %s102_s30 }
  0x16   :  { %p150_p8 = scmp.ne.s32.totalorder %s102_s30, %s149_s4  ;;  %p155_p10 = scmp.lt.s32.totalorder %s149_s4, %s149_s4 }
  0x17   :  { %vm41_vm0 = vcmp.lt.s32.totalorder %v40_v3, 32 }
  0x18   :  { %33 = vadd.xlane.f32.xlu0 %v30_v1  ;;  %p156_p11 = por %p155_p10, %p154_p9 }
  0x1a   :  { %p157_p12 = pnand %p156_p11, %p150_p8 }
  0xa1   :  { %v32_v4 = vpop.xlane.xlu0 %31 }
  0xa2   :  { %v35_v5 = vmul.f32 0.03125, %v32_v4 }
  0xa4   :  { %v37_v6 = vsub.f32 %v29_v0, %v35_v5 }
  0xa5   :  { %v34_v7 = vpop.xlane.xlu0 %33 }
  0xa6   :  { %v36_v8 = vmul.f32 0.03125, %v34_v7  ;;  %v44_v9 = vsel %vm41_vm0, %v37_v6, 0.0 }
  0xa7   :  { %v46_v10 = vmul.f32 %v44_v9, %v44_v9 }
  0xa8   :  { %v38_v11 = vsub.f32 %v30_v1, %v36_v8 }
  0xa9   :  { %48 = vadd.xlane.f32.xlu1 %v46_v10 }
  0xaa   :  { %v45_v12 = vsel %vm41_vm0, %v38_v11, 0.0 }
  0xab   :  { %v47_v13 = vmul.f32 %v45_v12, %v45_v12 }
  0xad   :  { %50 = vadd.xlane.f32.xlu1 %v47_v13 }
 0x136   :  { %v49_v14 = vpop.xlane.xlu1 %48 }
 0x137   :  { %v52_v15 = vmul.f32 0.03125, %v49_v14 }
 0x139   :  { %119 = vrsqrt.f32 %v52_v15  ;;  %vm56_vm1 = vcmp.eq.f32.partialorder %v52_v15, inf  ;;  %v59_v20 = vand.u32 2147483648, %v52_v15  ;;  %vm58_vm2 = vcmp.eq.f32.partialorder %v52_v15, 0.0 }
 0x13a   :  { %v51_v16 = vpop.xlane.xlu1 %50 }
 0x13b   :  { %v53_v17 = vmul.f32 0.03125, %v51_v16 }
 0x13d   :  { %121 = vrsqrt.f32 %v53_v17  ;;  %vm63_vm3 = vcmp.eq.f32.partialorder %v53_v17, inf  ;;  %v66_v26 = vand.u32 2147483648, %v53_v17  ;;  %vm65_vm4 = vcmp.eq.f32.partialorder %v53_v17, 0.0 }
 0x143   :  { %v120_v18 = vpop.eup %119 }
 0x144   :  { %v55_v19 = vmul.f32 %v120_v18, %v52_v15 }
 0x146   :  { %v57_v21 = vsel %vm56_vm1, %v52_v15, %v55_v19 }
 0x147   :  { %v122_v22 = vpop.eup %121  ;;  %v60_v23 = vsel %vm58_vm2, %v59_v20, %v57_v21 }
 0x148   :  { %v62_v24 = vmul.f32 %v122_v22, %v53_v17  ;;  %v68_v25 = vadd.f32 1e-06, %v60_v23 }
 0x14a   :  { %v64_v27 = vsel %vm63_vm3, %v53_v17, %v62_v24  ;;  %123 = vrcp.f32 %v68_v25 }
 0x14b   :  { %v67_v28 = vsel %vm65_vm4, %v66_v26, %v64_v27 }
 0x14c   :  { %v69_v29 = vadd.f32 1e-06, %v67_v28 }
 0x14e   :  { %125 = vrcp.f32 %v69_v29 }
 0x154   :  { %v124_v30 = vpop.eup %123 }
 0x155   :  { %v76_v32 = vmul.f32 %v124_v30, %v37_v6 }
 0x157   :  { %v84_v34 = vmul.f32 %v113_v31, %v76_v32 }
 0x158   :  { %v126_v35 = vpop.eup %125 }
 0x159   :  { %v77_v36 = vmul.f32 %v126_v35, %v38_v11  ;;  %v92_v37 = vadd.f32 %v114_v33, %v84_v34 }
 0x15b   :  { %v85_v38 = vmul.f32 %v113_v31, %v77_v36  ;;  %94 = vst [vmem:[#allocation5] sm:$0xff] %v92_v37 }
 0x15d   :  { %v93_v39 = vadd.f32 %v114_v33, %v85_v38 }
 0x15f   :  { %95 = vst [vmem:[#allocation5 + $0x8] sm:$0xff] %v93_v39 }
 0x160   :  { %160 = shalt.err (!%p157_p12)
}
 0x161   :  { %s161_s5 = scalar_lea.hbm %s238_s3, 256 }
 0x162   :  { %p162_p13 = scmp.ne.s32.totalorder %s238_s3, %s161_s5  ;;  %p165_p0 = scmp.lt.u32.totalorder %s161_s5, %s238_s3 }
 0x164   :  { %p167_p1 = pnand %p165_p0, %p162_p13 }
 0x166   :  { %170 = shalt.err (!%p167_p1)
}
 0x167   :  { %107 = dma.vmem_to_hbm [thread:$0]  %s102_s30, 256, %s238_s3, [#allocation4], %s176_s22, %s176_s22, %s177_s23  }
 0x168   :  { %173 = dma.done.wait [#allocation4], 256  }
 0x169   :  { %174 = vsyncadd [#allocation4], 4294967040 }
 0x16a   :  { %111 = vsyncpa [#allocation3], 1 }
 0x16b   :  { %112 = vsyncpa [#allocation4], 1 }

</bundles_post_ra>
